<compile_context>
chip_gen: v6e
topology: v6e:2x2x1
jax: 0.10.0
libtpu: 0.0.40
codegen_flags: <defaults>
</compile_context>

<pallas_src>
import jax
import jax.numpy as jnp
from jax.experimental import pallas as pl
from jax.experimental.pallas import tpu as pltpu

# Lane-dense slab widths to try (largest first); all multiples of 128.
_WIDTH_CANDIDATES = (4096, 2048, 1024, 512, 256, 128)
_MIN_GRID_STEPS = 8          # >= ~4 grid steps per TensorCore on v7x (2 TCs/chip)
_SUBLANE_MULTIPLE = 32       # safe row-block multiple for f32 / bf16 / int8 tiling


def star_relu_kernel(scale_ref, bias_ref, x_ref, o_ref):
    # scale/bias are f32 scalars in SMEM (matches the PyTorch f32 Parameters).
    s = scale_ref[0]
    b = bias_ref[0]
    # Compute in f32 regardless of input dtype; cast once at the store.
    x = x_ref[...].astype(jnp.float32)
    r = jnp.maximum(x, 0.0)
    o_ref[...] = (s * (r * r) + b).astype(o_ref.dtype)


def _choose_width(n):
    for w in _WIDTH_CANDIDATES:
        if n % w == 0:
            return w
    return None


def _vmem_budget():
    """Return (target_block_bytes, vmem_limit_bytes) per TPU generation."""
    try:
        cap = int(pltpu.get_tpu_info().vmem_capacity_bytes)
    except Exception:
        cap = None
    if cap is None:
        # Unknown backend: 2 MiB blocks fit every scoped-VMEM default.
        return 2 * 2**20, None
    if cap <= 64 * 2**20:
        # v7x: 64 MiB/TC VMEM, very fast HBM -> bigger blocks to amortize the
        # ~0.35 us per-grid-step overhead; raise the 32 MiB scoped default.
        return 8 * 2**20, 48 * 2**20
    # v5e / v6e (128 MiB physical VMEM): 4 MiB blocks (~16 MiB pipeline VMEM),
    # limit raised explicitly so v5e's 16 MiB scoped default is never exceeded.
    return 4 * 2**20, 32 * 2**20


def _star_relu_2d(x2d, scale, bias, out_dtype, target_block_bytes, vmem_limit):
    """Run the kernel over a lane-dense (rows, width) slab."""
    rows, width = x2d.shape
    in_item = jnp.dtype(x2d.dtype).itemsize
    out_item = jnp.dtype(out_dtype).itemsize
    itemsize = max(in_item, out_item)

    # Rows per block: hit the per-generation block-size target ...
    block_rows = max(1, target_block_bytes // (width * itemsize))
    # ... but keep the grid at least ~_MIN_GRID_STEPS long when possible so
    # megacore sharding and double-buffering stay effective.
    if rows >= _MIN_GRID_STEPS * _SUBLANE_MULTIPLE:
        cap = (rows // _MIN_GRID_STEPS // _SUBLANE_MULTIPLE) * _SUBLANE_MULTIPLE
        block_rows = min(block_rows, cap)
    if block_rows < rows:
        # Partial blocks must satisfy the (8,128) tiling rule; 32 is safe for
        # f32 / bf16 / int8 packing.
        block_rows = max(_SUBLANE_MULTIPLE,
                         (block_rows // _SUBLANE_MULTIPLE) * _SUBLANE_MULTIPLE)
    if block_rows >= rows:
        block_rows = rows  # full extent: always a legal block shape
    grid = (pl.cdiv(rows, block_rows),)  # ragged last block handled by Pallas

    n = rows * width
    cost = pl.CostEstimate(
        flops=4 * n,                             # relu, square, scale, bias
        transcendentals=0,
        bytes_accessed=n * (in_item + out_item),
    )

    return pl.pallas_call(
        star_relu_kernel,
        out_shape=jax.ShapeDtypeStruct((rows, width), out_dtype),
        grid_spec=pltpu.PrefetchScalarGridSpec(
            num_scalar_prefetch=0,
            grid=grid,
            in_specs=[
                pl.BlockSpec(memory_space=pltpu.MemorySpace.SMEM),  # scale (1,) f32
                pl.BlockSpec(memory_space=pltpu.MemorySpace.SMEM),  # bias  (1,) f32
                pl.BlockSpec((block_rows, width), lambda i: (i, 0)),
            ],
            out_specs=pl.BlockSpec((block_rows, width), lambda i: (i, 0)),
        ),
        compiler_params=pltpu.CompilerParams(
            dimension_semantics=("parallel",),   # shard blocks across TCs (v7x)
            vmem_limit_bytes=vmem_limit,
        ),
        cost_estimate=cost,
    )(scale, bias, x2d)


def star_relu(x, scale, bias):
    """StarReLU: scale * relu(x)**2 + bias, elementwise over any-shaped x."""
    orig_shape = x.shape
    # PyTorch: f32 Parameters promote the result (bf16 x -> f32 out).
    out_dtype = jnp.result_type(x.dtype, jnp.float32)
    scale = jnp.asarray(scale, jnp.float32).reshape((1,))
    bias = jnp.asarray(bias, jnp.float32).reshape((1,))
    n = x.size

    def _plain_eval(v):
        vf = v.astype(jnp.float32)
        return (scale[0] * jnp.maximum(vf, 0.0) ** 2 + bias[0]).astype(out_dtype)

    flat = x.reshape(-1)
    width = _choose_width(n)
    target_block_bytes, vmem_limit = _vmem_budget()

    if width is not None:
        out2d = _star_relu_2d(flat.reshape(n // width, width), scale, bias,
                              out_dtype, target_block_bytes, vmem_limit)
        return out2d.reshape(orig_shape)

    # Ragged case: n is not a multiple of 128.  No full-array pad/unpad passes:
    # run the kernel on the largest 128-divisible prefix, do the tiny tail in jnp.
    head_n = (n // 128) * 128
    if head_n == 0:
        return _plain_eval(flat).reshape(orig_shape)
    head_w = _choose_width(head_n)
    head_out = _star_relu_2d(flat[:head_n].reshape(head_n // head_w, head_w),
                             scale, bias, out_dtype, target_block_bytes,
                             vmem_limit).reshape(-1)
    tail_out = _plain_eval(flat[head_n:])
    return jnp.concatenate([head_out, tail_out]).reshape(orig_shape)


if __name__ == "__main__":
    key = jax.random.PRNGKey(0)
    # NCHW input, matching typical conv-arch usage of StarReLU.
    x = jax.random.normal(key, (2, 4, 16, 16), dtype=jnp.float32)

    # Deterministic parameter init mirroring StarReLU.__init__:
    #   scale = scale_value * ones(1) = 1.0, bias = bias_value * ones(1) = 0.0
    scale = jnp.ones((1,), dtype=jnp.float32) * 1.0
    bias = jnp.ones((1,), dtype=jnp.float32) * 0.0

    out = jax.block_until_ready(star_relu(x, scale, bias))
    ref = scale[0] * jnp.maximum(x, 0.0) ** 2 + bias[0]
    assert out.shape == x.shape and out.dtype == x.dtype
    assert jnp.allclose(out, ref, atol=1e-6, rtol=1e-6)

    # Ragged tiny size (< 128 elements): pure-jnp tail path.
    x2 = jax.random.normal(jax.random.PRNGKey(1), (3, 5, 7), dtype=jnp.float32)
    out2 = jax.block_until_ready(star_relu(x2, scale, bias))
    ref2 = scale[0] * jnp.maximum(x2, 0.0) ** 2 + bias[0]
    assert out2.shape == x2.shape
    assert jnp.allclose(out2, ref2, atol=1e-6, rtol=1e-6)

    # Ragged medium bf16 input: kernel on the 128-aligned prefix + jnp tail,
    # output promoted to f32 (matches PyTorch with f32 Parameters).
    x3 = jax.random.normal(jax.random.PRNGKey(2), (5, 200, 13), dtype=jnp.bfloat16)
    out3 = jax.block_until_ready(star_relu(x3, scale, bias))
    x3f = x3.astype(jnp.float32)
    ref3 = scale[0] * jnp.maximum(x3f, 0.0) ** 2 + bias[0]
    assert out3.shape == x3.shape and out3.dtype == jnp.float32
    assert jnp.allclose(out3, ref3, atol=1e-3, rtol=1e-3)

    print("KERNEL_OK")
</pallas_src>

<mosaic_0001>
module attributes {stable_mosaic.version = 11 : i64} {
  func.func @star_relu_kernel(%arg0: i32, %arg1: memref<1xf32, #tpu.memory_space<smem>>, %arg2: memref<1xf32, #tpu.memory_space<smem>>, %arg3: memref<1x2048xf32, #tpu.memory_space<vmem>>, %arg4: memref<1x2048xf32, #tpu.memory_space<vmem>>) attributes {dimension_semantics = [#tpu.dimension_semantics<parallel>], iteration_bounds = array<i64: 1>, scalar_prefetch = 0 : i64, scratch_operands = 0 : i64, tpu.core_type = #tpu.core_type<tc>, window_params = [{transform_indices = @transform_0, window_bounds = array<i64: 1>}, {transform_indices = @transform_1, window_bounds = array<i64: 1>}, {transform_indices = @transform_2, window_bounds = array<i64: 1, 2048>}, {transform_indices = @transform_3, window_bounds = array<i64: 1, 2048>}]} {
    %c0 = arith.constant 0 : index
    %0 = memref.load %arg1[%c0] : memref<1xf32, #tpu.memory_space<smem>>
    %c0_0 = arith.constant 0 : index
    %1 = memref.load %arg2[%c0_0] : memref<1xf32, #tpu.memory_space<smem>>
    %c0_1 = arith.constant 0 : index
    %c0_2 = arith.constant 0 : index
    %2 = vector.load %arg3[%c0_1, %c0_2] : memref<1x2048xf32, #tpu.memory_space<vmem>>, vector<1x2048xf32>
    %cst = arith.constant 0.000000e+00 : f32
    %3 = vector.broadcast %cst : f32 to vector<1x2048xf32>
    %4 = arith.maximumf %2, %3 : vector<1x2048xf32>
    %5 = arith.mulf %4, %4 : vector<1x2048xf32>
    %6 = vector.broadcast %0 : f32 to vector<1x2048xf32>
    %7 = arith.mulf %6, %5 : vector<1x2048xf32>
    %8 = vector.broadcast %1 : f32 to vector<1x2048xf32>
    %9 = arith.addf %7, %8 : vector<1x2048xf32>
    %c0_3 = arith.constant 0 : index
    %c0_4 = arith.constant 0 : index
    %10 = vector.load %arg4[%c0_3, %c0_4] : memref<1x2048xf32, #tpu.memory_space<vmem>>, vector<1x2048xf32>
    tpu.vector_store %arg4[%c0_3, %c0_4], %9 {strides = array<i32>} : memref<1x2048xf32, #tpu.memory_space<vmem>>, vector<1x2048xf32>,
    return
  }
  func.func @transform_0(%arg0: i32) -> i32 {
    %c0_i32 = arith.constant 0 : i32
    %c0_i32_0 = arith.constant 0 : i32
    return %c0_i32 : i32
  }
  func.func @transform_1(%arg0: i32) -> i32 {
    %c0_i32 = arith.constant 0 : i32
    %c0_i32_0 = arith.constant 0 : i32
    return %c0_i32 : i32
  }
  func.func @transform_2(%arg0: i32) -> (i32, i32) {
    %c0_i32 = arith.constant 0 : i32
    %c0_i32_0 = arith.constant 0 : i32
    return %arg0, %c0_i32 : i32, i32
  }
  func.func @transform_3(%arg0: i32) -> (i32, i32) {
    %c0_i32 = arith.constant 0 : i32
    %c0_i32_0 = arith.constant 0 : i32
    return %arg0, %c0_i32 : i32, i32
  }
}

</mosaic_0001>

<bundles_post_ra>
// kernel: tpu_custom_call.1
= control target key start
LH: loop header
LB: loop body
LE: loop exit
PB: predicated region body
PF: predicated region fallthrough
CT: control target
= control target key end

     0   :  { %10 = vsyncpa [#allocation5], 0  ;;  %s140_s0 = inlined_call_operand.<no memory space> [shape: f32[1], index: 0, kind: input, shape index: {}]   ;;  %s141_s1 = inlined_call_operand.<no memory space> [shape: f32[1], index: 1, kind: input, shape index: {}]   ;;  %s142_s2 = inlined_call_operand.hbm [shape: f32[1,2048], index: 2, kind: input, shape index: {}]   ;;  %s143_s3 = inlined_call_operand.hbm [shape: f32[1,2048], index: 3, kind: output, shape index: {}]  }
   0x1   :  { %11 = vsyncpa [#allocation6], 0  ;;  %s106_s12 = smov [#allocation4]  }
   0x2   :  { %s22_s13 = sshll.u32 %s106_s12, 4  ;;  %s23_s13 = int_to_ptr.vmem [resolvable:$true] %s22_s13 }
   0x3   :  { %s70_s14 = scalar_lea.vmem %s23_s13, 256  ;;  %p75_p1 = scmp.lt.s32.totalorder %s23_s13, %s23_s13 }
   0x4   :  { %p71_p0 = scmp.ne.s32.totalorder %s23_s13, %s70_s14  ;;  %p76_p2 = scmp.lt.s32.totalorder %s70_s14, %s70_s14 }
   0x6   :  { %p77_p3 = por %p76_p2, %p75_p1 }
   0x8   :  { %p78_p4 = pnand %p77_p3, %p71_p0 }
   0xa   :  { %81 = shalt.err (!%p78_p4)
}
   0xb   :  { %25 = dma.hbm_to_vmem [thread:$0]  %s142_s2, 256, %s23_s13, [#allocation5]  }
   0xc   :  { %102 = dma.done.wait [#allocation5], 256  }
   0xd   :  { %103 = vsyncadd [#allocation5], 4294967040  ;;  %v31_v0 = vld [vmem:[#allocation4] sm:$0xff]  ;;  %v32_v1 = vld [vmem:[#allocation4 + $0x8] sm:$0xff]  ;;  %v37_v4 = vstv %s140_s0  ;;  %v40_v7 = vstv %s141_s1  ;;  %s107_s21 = smov [#allocation7]  }
   0xe   :  { %v33_v2 = vmax.f32 %v31_v0, 0.0  ;;  %v34_v3 = vmax.f32 %v32_v1, 0.0  ;;  %s51_s22 = sshll.u32 %s107_s21, 4  ;;  %s52_s22 = int_to_ptr.vmem [resolvable:$true] %s51_s22 }
   0xf   :  { %s82_s2 = scalar_lea.vmem %s52_s22, 256  ;;  %p87_p6 = scmp.lt.s32.totalorder %s52_s22, %s52_s22 }
  0x10   :  { %v35_v5 = vmul.f32 %v33_v2, %v33_v2  ;;  %v36_v6 = vmul.f32 %v34_v3, %v34_v3  ;;  %p83_p5 = scmp.ne.s32.totalorder %s52_s22, %s82_s2  ;;  %p88_p7 = scmp.lt.s32.totalorder %s82_s2, %s82_s2 }
  0x12   :  { %v38_v8 = vmul.f32 %v37_v4, %v35_v5  ;;  %v39_v9 = vmul.f32 %v37_v4, %v36_v6  ;;  %p89_p8 = por %p88_p7, %p87_p6 }
  0x14   :  { %v41_v10 = vadd.f32 %v40_v7, %v38_v8  ;;  %v42_v11 = vadd.f32 %v40_v7, %v39_v9  ;;  %p90_p9 = pnand %p89_p8, %p83_p5 }
  0x16   :  { %43 = vst [vmem:[#allocation7] sm:$0xff] %v41_v10  ;;  %44 = vst [vmem:[#allocation7 + $0x8] sm:$0xff] %v42_v11 }
  0x17   :  { %93 = shalt.err (!%p90_p9)
}
  0x18   :  { %54 = dma.vmem_to_hbm [thread:$0]  %s52_s22, 256, %s143_s3, [#allocation6]  }
  0x19   :  { %104 = dma.done.wait [#allocation6], 256  }
  0x1a   :  { %105 = vsyncadd [#allocation6], 4294967040 }
  0x1b   :  { %58 = vsyncpa [#allocation5], 1 }
  0x1c   :  { %59 = vsyncpa [#allocation6], 1 }

</bundles_post_ra>
